<compile_context>
chip_gen: v5e
topology: v5e:2x2
jax: 0.10.0
libtpu: 0.0.40
codegen_flags: <defaults>
</compile_context>

<pallas_src>
import numpy as np

import jax
import jax.numpy as jnp
from jax.experimental import pallas as pl
from jax.experimental.pallas import tpu as pltpu


_LANES = 128                              # lane-dense last dim
_TARGET_BLOCK_BYTES = 4 * 1024 * 1024     # ~4 MiB per block buffer
_VMEM_LIMIT_BYTES = 32 * 1024 * 1024      # safe on v5e/v6e (128 MiB) and v7x (64 MiB)


def _sublane_tile(dtype):
    # Minimum second-to-last-dim tile: f32 -> 8, bf16/f16 -> 16, int8/fp8 -> 32.
    return max(8, 32 // np.dtype(dtype).itemsize)


# --------------------------------------------------------------------------
# Backward kernel: o = (-lambda) * g
# --------------------------------------------------------------------------
def _reverse_grad_kernel(lam_ref, g_ref, o_ref):
    neg_lam = -lam_ref[0]                       # f32 scalar from SMEM
    dt = o_ref.dtype
    if jnp.issubdtype(dt, jnp.floating) and np.dtype(dt).itemsize >= 2:
        # f32 / bf16 / f16: multiply directly in the gradient dtype
        # (v6e/v7x have bf16 VALU; no f32 pack/unpack round trip).
        o_ref[...] = g_ref[...] * neg_lam.astype(dt)
    else:
        # Low-precision / integer grads: scale in f32, cast back.
        o_ref[...] = (g_ref[...].astype(jnp.float32) * neg_lam).astype(dt)


def _reverse_and_scale(g, lam):
    """Compute -lam * g with a tiled, lane-dense Pallas kernel."""
    orig_shape = g.shape
    dtype = g.dtype
    n = g.size
    if n == 0:
        return g

    itemsize = np.dtype(dtype).itemsize
    sublane = _sublane_tile(dtype)

    flat = g.reshape(-1)
    rows = pl.cdiv(n, _LANES)                   # static Python int
    rem = n % _LANES
    if rem:
        # Rare path: pad at most 127 elements so the lane dim is exactly 128.
        flat = jnp.pad(flat, (0, _LANES - rem))
    g2d = flat.reshape(rows, _LANES)

    # ~4 MiB per block buffer, rounded down to the dtype's sublane tile.
    max_rows = max(sublane,
                   (_TARGET_BLOCK_BYTES // (_LANES * itemsize)) // sublane * sublane)
    # Small grads: block == full array (allowed even if rows % sublane != 0).
    # Large grads: sublane-aligned block; ragged last grid block handled by Pallas.
    block_rows = rows if rows <= max_rows else max_rows

    lam_arr = jnp.asarray(lam, dtype=jnp.float32).reshape(1)

    grid = (pl.cdiv(rows, block_rows),)
    out2d = pl.pallas_call(
        _reverse_grad_kernel,
        out_shape=jax.ShapeDtypeStruct((rows, _LANES), dtype),
        grid=grid,
        in_specs=[
            pl.BlockSpec(memory_space=pltpu.MemorySpace.SMEM),      # lambda
            pl.BlockSpec((block_rows, _LANES), lambda i: (i, 0)),   # grads
        ],
        out_specs=pl.BlockSpec((block_rows, _LANES), lambda i: (i, 0)),
        input_output_aliases={1: 0},   # donate/alias the cotangent buffer
        compiler_params=pltpu.CompilerParams(
            dimension_semantics=("parallel",),
            vmem_limit_bytes=_VMEM_LIMIT_BYTES),
    )(lam_arr, g2d)

    out_flat = out2d.reshape(-1)
    if rem:
        out_flat = out_flat[:n]
    return out_flat.reshape(orig_shape)


# --------------------------------------------------------------------------
# custom_vjp: identity forward, gradient-reversal backward
# --------------------------------------------------------------------------
@jax.custom_vjp
def _gradient_reversal(x, lam):
    del lam
    return x  # forward is a pure identity: no kernel, no HBM round trip


def _grl_fwd(x, lam):
    return x, lam


def _grl_bwd(lam, g):
    dx = _reverse_and_scale(g, lam)
    # lambda receives no gradient (matches PyTorch's `None`).
    return dx, jnp.zeros_like(lam)


_gradient_reversal.defvjp(_grl_fwd, _grl_bwd)


def gradient_reversal(x, lambda_val=1.0):
    """GRL: identity forward, dx = -lambda * dy backward.

    Pass `lambda_val` as a traced array argument to your jitted step (not a
    Python float captured in the closure) to avoid retracing when the DANN
    schedule ramps lambda — it rides through the kernel as an SMEM scalar.
    """
    lam = jnp.asarray(lambda_val, dtype=jnp.float32)
    return _gradient_reversal(x, lam)


class GradientReversalLayer:
    """JAX/Pallas port of the PyTorch GradientReversalLayer."""

    def __init__(self, lambda_val=1.0):
        self.lambda_val = float(lambda_val)

    def __call__(self, x):
        return gradient_reversal(x, self.lambda_val)


if __name__ == "__main__":
    key = jax.random.PRNGKey(0)
    # NCHW, small shapes: batch=2, channels=4, spatial=16x16
    x = jax.random.normal(key, (2, 4, 16, 16), dtype=jnp.float32)

    layer = GradientReversalLayer(lambda_val=1.0)

    # Forward: identity, no Pallas kernel (zero-cost pass-through).
    y = jax.block_until_ready(layer(x))
    assert y.shape == x.shape and y.dtype == x.dtype
    assert jnp.allclose(y, x), "forward of GRL must be identity"

    # Backward: gradient reversal through the tiled Pallas kernel.
    grad_fn = jax.grad(lambda inp: jnp.sum(layer(inp) * 2.0))
    dx = jax.block_until_ready(grad_fn(x))
    assert jnp.allclose(dx, -1.0 * 2.0 * jnp.ones_like(x)), "backward must be -lambda*g"

    # Runtime-lambda path: lambda is a traced jit argument -> no retrace, it
    # reaches the kernel as an SMEM scalar.
    @jax.jit
    def reversed_grad(inp, lam):
        return jax.grad(lambda z: jnp.sum(gradient_reversal(z, lam) * 2.0))(inp)

    dx_half = jax.block_until_ready(reversed_grad(x, jnp.float32(0.5)))
    assert jnp.allclose(dx_half, -0.5 * 2.0 * jnp.ones_like(x))
    dx_qtr = jax.block_until_ready(reversed_grad(x, jnp.float32(0.25)))
    assert jnp.allclose(dx_qtr, -0.25 * 2.0 * jnp.ones_like(x))

    # Non-128-multiple size exercises the (rare) 127-element-max pad path.
    x_odd = jax.random.normal(jax.random.PRNGKey(1), (3, 5, 7), dtype=jnp.float32)
    dx_odd = jax.block_until_ready(
        jax.grad(lambda inp: jnp.sum(layer(inp)))(x_odd))
    assert jnp.allclose(dx_odd, -1.0 * jnp.ones_like(x_odd))

    # bf16 gradients take the in-dtype multiply path (no f32 round trip).
    x_bf16 = x.astype(jnp.bfloat16)
    dx_bf16 = jax.block_until_ready(
        jax.grad(lambda inp: jnp.sum(layer(inp).astype(jnp.float32)))(x_bf16))
    assert dx_bf16.dtype == jnp.bfloat16
    assert jnp.allclose(dx_bf16.astype(jnp.float32), -1.0 * jnp.ones_like(x))

    print("KERNEL_OK")
</pallas_src>

<mosaic_0001>
module attributes {stable_mosaic.version = 11 : i64} {
  func.func @_reverse_grad_kernel(%arg0: i32, %arg1: memref<1xf32, #tpu.memory_space<smem>>, %arg2: memref<16x128xf32, #tpu.memory_space<vmem>>, %arg3: memref<16x128xf32, #tpu.memory_space<vmem>>) attributes {dimension_semantics = [#tpu.dimension_semantics<parallel>], iteration_bounds = array<i64: 1>, scalar_prefetch = 0 : i64, scratch_operands = 0 : i64, tpu.core_type = #tpu.core_type<tc>, window_params = [{transform_indices = @transform_0, window_bounds = array<i64: 1>}, {transform_indices = @transform_1, window_bounds = array<i64: 16, 128>}, {transform_indices = @transform_2, window_bounds = array<i64: 16, 128>}]} {
    %c0 = arith.constant 0 : index
    %0 = memref.load %arg1[%c0] : memref<1xf32, #tpu.memory_space<smem>>
    %cst = arith.constant 0.000000e+00 : f32
    %1 = arith.subf %cst, %0 : f32
    %c0_0 = arith.constant 0 : index
    %c0_1 = arith.constant 0 : index
    %2 = vector.load %arg2[%c0_0, %c0_1] : memref<16x128xf32, #tpu.memory_space<vmem>>, vector<16x128xf32>
    %3 = vector.broadcast %1 : f32 to vector<16x128xf32>
    %4 = arith.mulf %2, %3 : vector<16x128xf32>
    %c0_2 = arith.constant 0 : index
    %c0_3 = arith.constant 0 : index
    %5 = vector.load %arg3[%c0_2, %c0_3] : memref<16x128xf32, #tpu.memory_space<vmem>>, vector<16x128xf32>
    tpu.vector_store %arg3[%c0_2, %c0_3], %4 {strides = array<i32>} : memref<16x128xf32, #tpu.memory_space<vmem>>, vector<16x128xf32>,
    return
  }
  func.func @transform_0(%arg0: i32) -> i32 {
    %c0_i32 = arith.constant 0 : i32
    %c0_i32_0 = arith.constant 0 : i32
    return %c0_i32 : i32
  }
  func.func @transform_1(%arg0: i32) -> (i32, i32) {
    %c0_i32 = arith.constant 0 : i32
    %c0_i32_0 = arith.constant 0 : i32
    return %arg0, %c0_i32 : i32, i32
  }
  func.func @transform_2(%arg0: i32) -> (i32, i32) {
    %c0_i32 = arith.constant 0 : i32
    %c0_i32_0 = arith.constant 0 : i32
    return %arg0, %c0_i32 : i32, i32
  }
}

</mosaic_0001>

<bundles_post_ra>
// kernel: tpu_custom_call.1
= control target key start
LH: loop header
LB: loop body
LE: loop exit
PB: predicated region body
PF: predicated region fallthrough
CT: control target
= control target key end

     0   :  { %8 = vsyncpa [#allocation4], 0  ;;  %s141_s0 = inlined_call_operand.<no memory space> [shape: f32[1], index: 0, kind: input, shape index: {}]   ;;  %s142_s1 = inlined_call_operand.hbm [shape: f32[16,128], index: 1, kind: input, shape index: {}, may-alias: {1,2}]   ;;  %s143_s2 = inlined_call_operand.hbm [shape: f32[16,128], index: 2, kind: output, shape index: {}, may-alias: {1,2}]  }
   0x1   :  { %9 = vsyncpa [#allocation5], 0  ;;  %s16_s11 = sshll.u32 %s142_s1, 4  ;;  %s113_s12 = smov [#allocation3]   ;;  %s17_s11 = int_to_ptr.hbm [resolvable:$true] %s16_s11 }
   0x2   :  { %s18_s13 = sshll.u32 %s113_s12, 4  ;;  %s114_s14 = smov 128   ;;  %s19_s13 = int_to_ptr.vmem [resolvable:$true] %s18_s13 }
   0x3   :  { %s115_s15 = smov 8  }
   0x4   :  { %24 = dma.hbm_to_vmem [thread:$0]  %s17_s11, 256, %s19_s13, [#allocation4], %s114_s14, %s114_s14, %s115_s15  }
   0x5   :  { %109 = dma.done.wait [#allocation4], 256  }
   0x6   :  { %110 = vsyncadd [#allocation4], 4294967040  ;;  %s30_s18 = ssub.f32 0.0, %s141_s0  ;;  %s116_s19 = smov [#allocation6]   ;;  %v31_v1 = vld [vmem:[#allocation3] sm:$0xff]  ;;  %v32_v2 = vld [vmem:[#allocation3 + $0x8] sm:$0xff] }
   0x7   :  { %s42_s20 = sshll.u32 %s116_s19, 4  ;;  %s44_s1 = sshll.u32 %s143_s2, 4  ;;  %s43_s20 = int_to_ptr.vmem [resolvable:$true] %s42_s20  ;;  %s45_s1 = int_to_ptr.hbm [resolvable:$true] %s44_s1 }
   0x8   :  { %v33_v0 = vstv %s30_s18 }
   0x9   :  { %v34_v3 = vmul.f32 %v33_v0, %v31_v1  ;;  %v35_v4 = vmul.f32 %v33_v0, %v32_v2 }
   0xb   :  { %36 = vst [vmem:[#allocation6] sm:$0xff] %v34_v3 }
   0xc   :  { %37 = vst [vmem:[#allocation6 + $0x8] sm:$0xff] %v35_v4 }
   0xd   :  { %50 = dma.vmem_to_hbm [thread:$0]  %s43_s20, 256, %s45_s1, [#allocation5], %s114_s14, %s114_s14, %s115_s15  }
   0xe   :  { %111 = dma.done.wait [#allocation5], 256  }
   0xf   :  { %112 = vsyncadd [#allocation5], 4294967040 }
  0x10   :  { %55 = vsyncpa [#allocation4], 1 }
  0x11   :  { %56 = vsyncpa [#allocation5], 1 }

</bundles_post_ra>
